<compile_context>
chip_gen: v7x
topology: tpu7x:2x2x1
jax: 0.10.0
libtpu: 0.0.40
codegen_flags: <defaults>
</compile_context>

<pallas_src>
import functools

import jax
import jax.numpy as jnp
from jax.experimental import pallas as pl
from jax.experimental.pallas import tpu as pltpu


# ------------------------------- Pallas kernel ------------------------------ #

def _rnn_gate_kernel(slab_ref, w_ref, pwb_ref, out_ref, *, hidden):
    H = hidden
    G = 4 * H

    slab = slab_ref[...]                                  # (T, 4H) = [x | h | c | 1,0..]
    tb = slab.shape[0]

    # Single fused MXU matmul. w rows = [Wih | Whh | 0 | bias-row, 0..]:
    # the c lanes hit zero rows and the ones-lane injects the LSTM bias, so
    # gates = x@Wih + h@Whh + (b_ih + b_hh), lanes [z_i | z_f | z_g | z_o].
    gates = jnp.dot(slab, w_ref[...], preferred_element_type=jnp.float32)

    lane = jax.lax.broadcasted_iota(jnp.int32, (tb, G), 1)
    is_g = jnp.logical_and(lane >= 2 * H, lane < 3 * H)

    # Full-width nonlinearities (no 32-lane sub-tile slices):
    # a = [I | F | Gc | O] with sigmoid on i/f/o groups and tanh on the cell gate.
    a = jnp.where(is_g, jnp.tanh(gates), jax.nn.sigmoid(gates))

    a_p1 = pltpu.roll(a, H, 1)                            # [O  | I  | F  | Gc]
    a_p3 = pltpu.roll(a, 3 * H, 1)                        # [F  | Gc | O  | I ]
    s_p3 = pltpu.roll(slab, 3 * H, 1)                     # [h  | c  | .. | x ]

    # Group-1 lanes hold c_new = F*c + I*Gc (other lanes: finite garbage).
    c_full = a * s_p3 + a_p1 * a_p3
    # Group-0 lanes hold tanh(c_new), then h_new = O * tanh(c_new).
    tc = jnp.tanh(pltpu.roll(c_full, 3 * H, 1))
    h_full = a_p1 * tc

    # 1x1-conv projection + threshold.  pwb lanes: [w_proj | 0 | 0 | b_proj@3H, 0..].
    # Forcing lane 3H of h to 1.0 makes the full-lane reduction equal
    # sum(h_new * w_proj) + b_proj.  sigmoid(z) > 0.5  <=>  z > 0.
    h_aug = jnp.where(lane == 3 * H, 1.0, h_full)
    logit = jnp.sum(h_aug * pwb_ref[...], axis=-1, keepdims=True)   # (T, 1)
    act = jnp.where(logit > 0.0, 1.0, 0.0)

    # Lane-dense packed output slab: [h_new | c_new | action | 0].
    out = jnp.where(lane < H, h_full,
          jnp.where(lane < 2 * H, c_full,
          jnp.where(lane < 3 * H, act, 0.0)))
    out_ref[...] = out.astype(out_ref.dtype)


# --------------------------- one-time weight packing ------------------------- #

def pack_rnn_gate_params(params):
    """Repack PyTorch-layout parameters ONCE into the fused kernel layouts."""
    w_ih = jnp.asarray(params["weight_ih_l0"], jnp.float32)        # (4H, D)
    w_hh = jnp.asarray(params["weight_hh_l0"], jnp.float32)        # (4H, D)
    four_h, D = w_ih.shape
    H = four_h // 4
    assert H == D, "RNNGatePolicy forward requires input_dim == hidden_dim"
    assert w_hh.shape == (4 * H, D)
    G = 4 * H

    bias = (jnp.asarray(params["bias_ih_l0"], jnp.float32)
            + jnp.asarray(params["bias_hh_l0"], jnp.float32)).reshape(1, G)

    # Fused gate weight (G, G): rows [x-rows | h-rows | zero c-rows | bias-row, zeros].
    w_full = jnp.concatenate([
        jnp.transpose(w_ih),                                       # (D, 4H)
        jnp.transpose(w_hh),                                       # (D, 4H)
        jnp.zeros((D, G), jnp.float32),                            # c rows
        jnp.concatenate([bias, jnp.zeros((D - 1, G), jnp.float32)], axis=0),
    ], axis=0)

    # Projection constant: lanes [0,H) = conv weight, lane 3H = conv bias.
    w_proj = jnp.asarray(params["proj_w"], jnp.float32)[0, :, 0, 0]  # (H,)
    b_proj = jnp.asarray(params["proj_b"], jnp.float32).reshape(())
    pwb = jnp.zeros((1, G), jnp.float32)
    pwb = pwb.at[0, 0:H].set(w_proj)
    pwb = pwb.at[0, 3 * H].set(b_proj)

    return {"w_full": w_full, "pwb": pwb}


# ------------------------------ wrapper (glue) ------------------------------ #

@jax.jit
def rnn_gate_policy_forward(x, ch, cc, packed):
    """x: (B, D) f32; ch, cc: (1, B, D) f32.  Returns (action, ch', cc')."""
    B, D = x.shape
    w_full, pwb = packed["w_full"], packed["pwb"]
    G = w_full.shape[1]
    H = G // 4
    assert H == D and w_full.shape == (G, G) and pwb.shape == (1, G)

    # Batch tiling: rows padded to 8; tiles capped around 4096 rows; at least
    # two tiles for large batches so the "parallel" axis shards across v7x TCs.
    ALIGN = 8
    b_pad8 = -(-B // ALIGN) * ALIGN
    n_tiles = max(1, -(-b_pad8 // 4096))
    if b_pad8 > 512:
        n_tiles = max(n_tiles, 2)
    tile_b = -(-b_pad8 // (n_tiles * ALIGN)) * ALIGN
    b_padded = tile_b * n_tiles

    # Packed lane-dense input slab: [x | h | c | 1, 0...] -> (Bp, 4D).
    xs = x.astype(jnp.float32)
    hs = ch.reshape(B, D).astype(jnp.float32)
    cs = cc.reshape(B, D).astype(jnp.float32)
    ones = jnp.ones((B, 1), jnp.float32)
    slab = jnp.concatenate([xs, hs, cs, ones], axis=-1)             # (B, 3D+1)
    slab = jnp.pad(slab, ((0, b_padded - B), (0, G - (3 * D + 1))))

    row_spec = pl.BlockSpec((tile_b, G), lambda i: (i, 0))

    out = pl.pallas_call(
        functools.partial(_rnn_gate_kernel, hidden=H),
        out_shape=jax.ShapeDtypeStruct((b_padded, G), jnp.float32),
        grid=(n_tiles,),
        in_specs=[row_spec,
                  pl.BlockSpec((G, G), lambda i: (0, 0)),
                  pl.BlockSpec((1, G), lambda i: (0, 0))],
        out_specs=row_spec,
        compiler_params=pltpu.CompilerParams(
            dimension_semantics=("parallel",)),
    )(slab, w_full, pwb)

    h_new = out[:B, 0:D]
    c_new = out[:B, D:2 * D]
    action = out[:B, 2 * D:2 * D + 1]
    return (action.reshape(B, 1, 1, 1),
            h_new.reshape(1, B, D),
            c_new.reshape(1, B, D))


# ---------------------------- pure-JAX reference ---------------------------- #

def _reference(x, ch, cc, params):
    """Mirrors the PyTorch forward (via the *_t transposed parameters)."""
    B, D = x.shape
    H = D
    hp = jax.lax.Precision.HIGHEST
    w_ih_t = jnp.transpose(params["weight_ih_l0"].reshape(4, H, D), (0, 2, 1))
    w_hh_t = jnp.transpose(params["weight_hh_l0"].reshape(4, H, D), (0, 2, 1))
    b_ih_t = params["bias_ih_l0"].reshape(4, 1, H)
    b_hh_t = params["bias_hh_l0"].reshape(4, 1, H)

    ih = jnp.matmul(x.reshape(1, B, D), w_ih_t, precision=hp) + b_ih_t
    hh = jnp.matmul(ch, w_hh_t, precision=hp) + b_hh_t

    ingate = jax.nn.sigmoid(ih[0] + hh[0])
    forgetgate = jax.nn.sigmoid(ih[1] + hh[1])
    cellgate = jnp.tanh(ih[2] + hh[2])
    outgate = jax.nn.sigmoid(ih[3] + hh[3])
    state_c = forgetgate * cc[0] + ingate * cellgate
    state_h = outgate * jnp.tanh(state_c)

    proj = jnp.matmul(state_h, params["proj_w"][:, :, 0, 0].T, precision=hp)
    proj = proj + params["proj_b"]
    prob = jax.nn.sigmoid(proj.reshape(B))
    action = jnp.where(prob > 0.5, jnp.ones_like(prob), jnp.zeros_like(prob))
    return action.reshape(B, 1, 1, 1), state_h.reshape(1, B, H), state_c.reshape(1, B, H)


# ----------------------------------- main ----------------------------------- #

if __name__ == "__main__":
    B, D = 2, 32          # batch=2, input_dim == hidden_dim == 32

    key = jax.random.PRNGKey(0)
    k = jax.random.split(key, 9)
    params = {
        # PyTorch parameter layouts
        "weight_ih_l0": 0.3 * jax.random.normal(k[0], (4 * D, D), jnp.float32),
        "weight_hh_l0": 0.3 * jax.random.normal(k[1], (4 * D, D), jnp.float32),
        "bias_ih_l0":   0.3 * jax.random.normal(k[2], (4 * D,), jnp.float32),
        "bias_hh_l0":   0.3 * jax.random.normal(k[3], (4 * D,), jnp.float32),
        "proj_w":       0.3 * jax.random.normal(k[4], (1, D, 1, 1), jnp.float32),
        "proj_b":       0.3 * jax.random.normal(k[5], (1,), jnp.float32),
    }
    x = jax.random.normal(k[6], (B, D), jnp.float32)
    ch = jax.random.normal(k[7], (1, B, D), jnp.float32)
    cc = jax.random.normal(k[8], (1, B, D), jnp.float32)

    packed = pack_rnn_gate_params(params)   # one-time repack, hoisted out of the step
    action, ch_new, cc_new = rnn_gate_policy_forward(x, ch, cc, packed)
    action = jax.block_until_ready(action)

    ref_action, ref_ch, ref_cc = _reference(x, ch, cc, params)
    assert action.shape == (B, 1, 1, 1), action.shape
    assert ch_new.shape == (1, B, D) and cc_new.shape == (1, B, D)
    assert jnp.allclose(ch_new, ref_ch, atol=5e-5, rtol=5e-5), \
        float(jnp.max(jnp.abs(ch_new - ref_ch)))
    assert jnp.allclose(cc_new, ref_cc, atol=5e-5, rtol=5e-5), \
        float(jnp.max(jnp.abs(cc_new - ref_cc)))
    assert jnp.array_equal(action, ref_action)

    print("KERNEL_OK")
</pallas_src>

<mosaic_0001>
module attributes {stable_mosaic.version = 11 : i64} {
  func.func @_rnn_gate_kernel(%arg0: i32, %arg1: memref<8x128xf32, #tpu.memory_space<vmem>>, %arg2: memref<128x128xf32, #tpu.memory_space<vmem>>, %arg3: memref<1x128xf32, #tpu.memory_space<vmem>>, %arg4: memref<8x128xf32, #tpu.memory_space<vmem>>) attributes {dimension_semantics = [#tpu.dimension_semantics<parallel>], iteration_bounds = array<i64: 1>, scalar_prefetch = 0 : i64, scratch_operands = 0 : i64, tpu.core_type = #tpu.core_type<tc>, window_params = [{transform_indices = @transform_0, window_bounds = array<i64: 8, 128>}, {pipeline_mode = #tpu.pipeline_mode<synchronous>, transform_indices = @transform_1, window_bounds = array<i64: 128, 128>}, {pipeline_mode = #tpu.pipeline_mode<synchronous>, transform_indices = @transform_2, window_bounds = array<i64: 1, 128>}, {transform_indices = @transform_3, window_bounds = array<i64: 8, 128>}]} {
    %c0 = arith.constant 0 : index
    %c0_0 = arith.constant 0 : index
    %0 = vector.load %arg1[%c0, %c0_0] : memref<8x128xf32, #tpu.memory_space<vmem>>, vector<8x128xf32>
    %c0_1 = arith.constant 0 : index
    %c0_2 = arith.constant 0 : index
    %1 = vector.load %arg2[%c0_1, %c0_2] : memref<128x128xf32, #tpu.memory_space<vmem>>, vector<128x128xf32>
    %cst = arith.constant dense<0.000000e+00> : vector<8x128xf32>
    %2 = tpu.matmul %0, %1, %cst {dimension_numbers = #tpu.dot_dimension_numbers<[1], [0], [0], [1], [0, 0, 1, 1], [], []>} : vector<8x128xf32>, vector<128x128xf32>, vector<8x128xf32> -> vector<8x128xf32>
    %3 = tpu.iota {dimensions = array<i32: 1>} : vector<8x128xi32>
    %c64_i32 = arith.constant 64 : i32
    %4 = vector.broadcast %c64_i32 : i32 to vector<8x128xi32>
    %5 = arith.cmpi sge, %3, %4 : vector<8x128xi32>
    %c96_i32 = arith.constant 96 : i32
    %6 = vector.broadcast %c96_i32 : i32 to vector<8x128xi32>
    %7 = arith.cmpi slt, %3, %6 : vector<8x128xi32>
    %8 = arith.andi %5, %7 : vector<8x128xi1>
    %9 = math.tanh %2 : vector<8x128xf32>
    %10 = arith.negf %2 : vector<8x128xf32>
    %11 = math.exp %10 : vector<8x128xf32>
    %cst_3 = arith.constant 1.000000e+00 : f32
    %12 = vector.broadcast %cst_3 : f32 to vector<8x128xf32>
    %13 = arith.addf %12, %11 : vector<8x128xf32>
    %14 = arith.divf %12, %13 : vector<8x128xf32>
    %15 = arith.select %8, %9, %14 : vector<8x128xi1>, vector<8x128xf32>
    %c32_i32 = arith.constant 32 : i32
    %16 = tpu.dynamic_rotate %15 by %c32_i32 dim 1 : vector<8x128xf32>, i32 -> vector<8x128xf32>
    %c96_i32_4 = arith.constant 96 : i32
    %17 = tpu.dynamic_rotate %15 by %c96_i32_4 dim 1 : vector<8x128xf32>, i32 -> vector<8x128xf32>
    %c96_i32_5 = arith.constant 96 : i32
    %18 = tpu.dynamic_rotate %0 by %c96_i32_5 dim 1 : vector<8x128xf32>, i32 -> vector<8x128xf32>
    %19 = arith.mulf %15, %18 : vector<8x128xf32>
    %20 = arith.mulf %16, %17 : vector<8x128xf32>
    %21 = arith.addf %19, %20 : vector<8x128xf32>
    %c96_i32_6 = arith.constant 96 : i32
    %22 = tpu.dynamic_rotate %21 by %c96_i32_6 dim 1 : vector<8x128xf32>, i32 -> vector<8x128xf32>
    %23 = math.tanh %22 : vector<8x128xf32>
    %24 = arith.mulf %16, %23 : vector<8x128xf32>
    %c96_i32_7 = arith.constant 96 : i32
    %25 = vector.broadcast %c96_i32_7 : i32 to vector<8x128xi32>
    %26 = arith.cmpi eq, %3, %25 : vector<8x128xi32>
    %cst_8 = arith.constant 1.000000e+00 : f32
    %27 = vector.broadcast %cst_8 : f32 to vector<8x128xf32>
    %28 = arith.select %26, %27, %24 : vector<8x128xi1>, vector<8x128xf32>
    %c0_9 = arith.constant 0 : index
    %c0_10 = arith.constant 0 : index
    %29 = vector.load %arg3[%c0_9, %c0_10] : memref<1x128xf32, #tpu.memory_space<vmem>>, vector<1x128xf32>
    %30 = vector.broadcast %29 : vector<1x128xf32> to vector<8x128xf32>
    %31 = arith.mulf %28, %30 : vector<8x128xf32>
    %cst_11 = arith.constant dense<0.000000e+00> : vector<8xf32>
    %32 = vector.multi_reduction <add>, %31, %cst_11 [1] : vector<8x128xf32> to vector<8xf32>
    %33 = vector.shape_cast %32 : vector<8xf32> to vector<8x1xf32>
    %cst_12 = arith.constant 0.000000e+00 : f32
    %34 = vector.broadcast %cst_12 : f32 to vector<8x1xf32>
    %35 = arith.cmpf ogt, %33, %34 : vector<8x1xf32>
    %cst_13 = arith.constant 1.000000e+00 : f32
    %cst_14 = arith.constant 0.000000e+00 : f32
    %36 = vector.broadcast %cst_13 : f32 to vector<8x1xf32>
    %37 = vector.broadcast %cst_14 : f32 to vector<8x1xf32>
    %38 = arith.select %35, %36, %37 : vector<8x1xi1>, vector<8x1xf32>
    %c32_i32_15 = arith.constant 32 : i32
    %39 = vector.broadcast %c32_i32_15 : i32 to vector<8x128xi32>
    %40 = arith.cmpi slt, %3, %39 : vector<8x128xi32>
    %c64_i32_16 = arith.constant 64 : i32
    %41 = vector.broadcast %c64_i32_16 : i32 to vector<8x128xi32>
    %42 = arith.cmpi slt, %3, %41 : vector<8x128xi32>
    %c96_i32_17 = arith.constant 96 : i32
    %43 = vector.broadcast %c96_i32_17 : i32 to vector<8x128xi32>
    %44 = arith.cmpi slt, %3, %43 : vector<8x128xi32>
    %cst_18 = arith.constant 0.000000e+00 : f32
    %45 = vector.shape_cast %38 : vector<8x1xf32> to vector<8x1xf32>
    %46 = vector.broadcast %45 : vector<8x1xf32> to vector<8x128xf32>
    %47 = vector.broadcast %cst_18 : f32 to vector<8x128xf32>
    %48 = arith.select %44, %46, %47 : vector<8x128xi1>, vector<8x128xf32>
    %49 = arith.select %42, %21, %48 : vector<8x128xi1>, vector<8x128xf32>
    %50 = arith.select %40, %24, %49 : vector<8x128xi1>, vector<8x128xf32>
    %c0_19 = arith.constant 0 : index
    %c0_20 = arith.constant 0 : index
    %51 = vector.load %arg4[%c0_19, %c0_20] : memref<8x128xf32, #tpu.memory_space<vmem>>, vector<8x128xf32>
    tpu.vector_store %arg4[%c0_19, %c0_20], %50 {strides = array<i32>} : memref<8x128xf32, #tpu.memory_space<vmem>>, vector<8x128xf32>,
    return
  }
  func.func @transform_0(%arg0: i32) -> (i32, i32) {
    %c0_i32 = arith.constant 0 : i32
    %c0_i32_0 = arith.constant 0 : i32
    return %arg0, %c0_i32 : i32, i32
  }
  func.func @transform_1(%arg0: i32) -> (i32, i32) {
    %c0_i32 = arith.constant 0 : i32
    %c0_i32_0 = arith.constant 0 : i32
    %c0_i32_1 = arith.constant 0 : i32
    return %c0_i32, %c0_i32_0 : i32, i32
  }
  func.func @transform_2(%arg0: i32) -> (i32, i32) {
    %c0_i32 = arith.constant 0 : i32
    %c0_i32_0 = arith.constant 0 : i32
    %c0_i32_1 = arith.constant 0 : i32
    return %c0_i32, %c0_i32_0 : i32, i32
  }
  func.func @transform_3(%arg0: i32) -> (i32, i32) {
    %c0_i32 = arith.constant 0 : i32
    %c0_i32_0 = arith.constant 0 : i32
    return %arg0, %c0_i32 : i32, i32
  }
}

</mosaic_0001>

<bundles_post_ra>
// kernel: rnn_gate_policy_forward.1
= control target key start
LH: loop header
LB: loop body
LE: loop exit
PB: predicated region body
PF: predicated region fallthrough
CT: control target
= control target key end

     0   :  { %8 = vsyncpa [#allocation3], 0  ;;  %s284_s12 = smov [#allocation2]   ;;  %s340_s0 = inlined_call_operand.vmem [shape: f32[8,128], index: 0, kind: input, shape index: {}]   ;;  %s341_s1 = inlined_call_operand.hbm [shape: f32[128,128], index: 1, kind: input, shape index: {}]   ;;  %s342_s2 = inlined_call_operand.vmem [shape: f32[1,128], index: 2, kind: input, shape index: {}]   ;;  %s343_s3 = inlined_call_operand.vmem [shape: f32[8,128], index: 3, kind: output, shape index: {}]  }
   0x1   :  { %s16_s13 = sshll.u32 %s284_s12, 4  ;;  %s260_s16 = scalar_lea.hbm %s341_s1, 2048  ;;  %s17_s13 = int_to_ptr.vmem [resolvable:$true] %s16_s13 }
   0x2   :  { %p261_p0 = scmp.ne.s32.totalorder %s341_s1, %s260_s16  ;;  %p264_p1 = scmp.lt.u32.totalorder %s260_s16, %s341_s1 }
   0x4   :  { %p266_p2 = pnand %p264_p1, %p261_p0 }
   0x6   :  { %269 = shalt.err (!%p266_p2)
}
   0x7   :  { %s270_s21 = scalar_lea.vmem %s17_s13, 2048  ;;  %p275_p4 = scmp.lt.s32.totalorder %s17_s13, %s17_s13 }
   0x8   :  { %p271_p3 = scmp.ne.s32.totalorder %s17_s13, %s270_s21  ;;  %p276_p5 = scmp.lt.s32.totalorder %s270_s21, %s270_s21 }
   0xa   :  { %p277_p6 = por %p276_p5, %p275_p4 }
   0xc   :  { %p278_p7 = pnand %p277_p6, %p271_p3 }
   0xe   :  { %281 = shalt.err (!%p278_p7)
}
   0xf   :  { %s285_s22 = smov 128   ;;  %s286_s23 = smov 8  }
  0x10   :  { %22 = dma.hbm_to_vmem [thread:$0]  %s341_s1, 2048, %s17_s13, [#allocation3], %s285_s22, %s285_s22, %s286_s23  }
  0x11   :  { %282 = dma.done.wait [#allocation3], 2048  }
  0x12   :  { %283 = vsyncadd [#allocation3], 4294965248  ;;  %v287_v0 = vmov 0.0|0.0   ;;  %vm288_vm0 = vmmov 0   ;;  %v289_v1 = vmov 0.0   ;;  %v29_v2 = vld [vmem:[#allocation2] sm:$0xff]  ;;  %v115_v31 = vlaneseq }
  0x13   :  { %220 = vmatprep.subr.bf16.mxu0 %v287_v0  ;;  %217 = vmatprep.mubr.msk.f32.mxu0 %vm288_vm0, %v289_v1  ;;  %v30_v3 = vld [vmem:[#allocation2 + $0x8] sm:$0xff]  ;;  %v31_v4 = vld [vmem:[#allocation2 + $0x10] sm:$0xff]  ;;  %v32_v6 = vld [vmem:[#allocation2 + $0x18] sm:$0xff]  ;;  %s290_s27 = smov 96  }
  0x14   :  { %v221_v5 = vpack.c.bf16 %v30_v3, %v29_v2  ;;  %v224_v7 = vpack.c.bf16 %v32_v6, %v31_v4  ;;  %v33_v8 = vld [vmem:[#allocation2 + $0x20] sm:$0xff]  ;;  %v34_v9 = vld [vmem:[#allocation2 + $0x28] sm:$0xff]  ;;  %v35_v12 = vld [vmem:[#allocation2 + $0x30] sm:$0xff]  ;;  %v116_v33 = vand.u32 127, %v115_v31 }
  0x15   :  { %v28_v10 = vld [vmem:[%s340_s0] sm:$0xff]  ;;  %v227_v11 = vpack.c.bf16 %v34_v9, %v33_v8  ;;  %v36_v13 = vld [vmem:[#allocation2 + $0x38] sm:$0xff]  ;;  %v38_v16 = vld [vmem:[#allocation2 + $0x48] sm:$0xff]  ;;  %s291_s0 = smov 32  }
  0x16   :  { %222 = vmatpush3.bf16.msra.mxu0 %v221_v5  ;;  %132 = vrot.lane.b32.xlu1 %v28_v10, %s290_s27  ;;  %v230_v14 = vpack.c.bf16 %v36_v13, %v35_v12  ;;  %v37_v15 = vld [vmem:[#allocation2 + $0x40] sm:$0xff]  ;;  %v39_v18 = vld [vmem:[#allocation2 + $0x50] sm:$0xff]  ;;  %v40_v19 = vld [vmem:[#allocation2 + $0x58] sm:$0xff]  ;;  %vm117_vm1 = vcmp.ge.s32.totalorder %v116_v33, 64  ;;  %vm118_vm2 = vcmp.lt.s32.totalorder %v116_v33, 96  ;;  %vm141_vm4 = vcmp.eq.s32.totalorder %v116_v33, 96 }
  0x17   :  { %223 = vmatprep.subr.bf16.mxu0 %v287_v0  ;;  %v233_v17 = vpack.c.bf16 %v38_v16, %v37_v15  ;;  %v236_v20 = vpack.c.bf16 %v40_v19, %v39_v18  ;;  %v41_v21 = vld [vmem:[#allocation2 + $0x60] sm:$0xff]  ;;  %v42_v22 = vld [vmem:[#allocation2 + $0x68] sm:$0xff]  ;;  %v43_v24 = vld [vmem:[#allocation2 + $0x70] sm:$0xff]  ;;  %vm156_vm5 = vcmp.lt.s32.totalorder %v116_v33, 64  ;;  %vm155_vm7 = vcmp.lt.s32.totalorder %v116_v33, 32 }
  0x18   :  { %v239_v23 = vpack.c.bf16 %v42_v22, %v41_v21  ;;  %v44_v25 = vld [vmem:[#allocation2 + $0x78] sm:$0xff]  ;;  %vm119_vm3 = vmand %vm117_vm1, %vm118_vm2  ;;  %v167_v46 = vld [vmem:[%s342_s2] ss:$0 sm:$0xff] }
  0x19   :  { %v242_v26 = vpack.c.bf16 %v44_v25, %v43_v24 }
  0x1a   :  { %225 = vmatpush3.bf16.msra.mxu0 %v224_v7 }
  0x1b   :  { %226 = vmatprep.subr.bf16.mxu0 %v287_v0 }
  0x1e   :  { %228 = vmatpush3.bf16.msra.mxu0 %v227_v11 }
  0x1f   :  { %229 = vmatprep.subr.bf16.mxu0 %v287_v0 }
  0x22   :  { %231 = vmatpush3.bf16.msra.mxu0 %v230_v14 }
  0x23   :  { %232 = vmatprep.subr.bf16.mxu0 %v287_v0 }
  0x26   :  { %234 = vmatpush3.bf16.msra.mxu0 %v233_v17 }
  0x27   :  { %235 = vmatprep.subr.bf16.mxu0 %v287_v0 }
  0x2a   :  { %237 = vmatpush3.bf16.msra.mxu0 %v236_v20 }
  0x2b   :  { %238 = vmatprep.subr.bf16.mxu0 %v287_v0 }
  0x2e   :  { %240 = vmatpush3.bf16.msra.mxu0 %v239_v23 }
  0x2f   :  { %241 = vmatprep.subr.bf16.mxu0 %v287_v0 }
  0x32   :  { %243 = vmatpush3.bf16.msra.mxu0 %v242_v26 }
  0x35   :  { %218 = vmatmul.mubr.f32.vlgmr.msra.gmra.mrb[0].mxu0 %v28_v10 }
  0x88   :  { %v133_v38 = vpop.permute.xlu1 %132 }
 0x108   :  { %v111_v27 = vpop.f32.mrb[0].mxu0 }
 0x109   :  { %v166_v28 = vmul.f32 -1.442695, %v111_v27  ;;  %v219_v29 = vpop.f32.mrb[1].mxu0 }
 0x10b   :  { %252 = vpow2.f32 %v166_v28 }
 0x10c   :  { %254 = vtanh.f32 %v111_v27 }
 0x115   :  { %v253_v30 = vpop.eup %252 }
 0x116   :  { %v124_v32 = vadd.f32 1.0, %v253_v30  ;;  %v255_v34 = vpop.eup %254 }
 0x118   :  { %256 = vrcp.f32 %v124_v32 }
 0x122   :  { %v257_v35 = vpop.eup %256 }
 0x123   :  { %v127_v36 = vsel %vm119_vm3, %v255_v34, %v257_v35 }
 0x124   :  { %128 = vrot.lane.b32.xlu0 %v127_v36, %s291_s0  ;;  %v134_v40 = vmul.f32 %v133_v38, %v127_v36 }
 0x128   :  { %130 = vrot.lane.b32.xlu0 %v127_v36, %s290_s27 }
 0x196   :  { %v129_v37 = vpop.permute.xlu0 %128 }
 0x19a   :  { %v131_v39 = vpop.permute.xlu0 %130 }
 0x19b   :  { %v135_v41 = vmul.f32 %v131_v39, %v129_v37 }
 0x19d   :  { %v136_v42 = vadd.f32 %v135_v41, %v134_v40 }
 0x19f   :  { %137 = vrot.lane.b32.xlu1 %v136_v42, %s290_s27 }
 0x211   :  { %v138_v43 = vpop.permute.xlu1 %137 }
 0x212   :  { %258 = vtanh.f32 %v138_v43 }
 0x21c   :  { %v259_v44 = vpop.eup %258 }
 0x21d   :  { %v140_v45 = vmul.f32 %v259_v44, %v129_v37 }
 0x21f   :  { %v142_v47 = vsel %vm141_vm4, 1.0, %v140_v45 }
 0x220   :  { %v150_v48 = vmul.f32 %v167_v46, %v142_v47 }
 0x222   :  { %151 = vadd.xlane.f32.xlu0 %v150_v48 }
 0x2af   :  { %v152_v49 = vpop.xlane.xlu0 %151 }
 0x2b0   :  { %vm153_vm6 = vcmp.gt.f32.partialorder %v152_v49, 0.0 }
 0x2b1   :  { %v154_v50 = vsel %vm153_vm6, 1.0, %v289_v1 }
 0x2b2   :  { %v157_v51 = vsel %vm118_vm2, %v154_v50, 0.0 }
 0x2b3   :  { %v158_v52 = vsel %vm156_vm5, %v136_v42, %v157_v51 }
 0x2b4   :  { %v159_v53 = vsel %vm155_vm7, %v140_v45, %v158_v52 }
 0x2b5   :  { %160 = vst [vmem:[%s343_s3] sm:$0xff] %v159_v53 }
 0x2b6   :  { %165 = vsyncpa [#allocation3], 1 }

</bundles_post_ra>
